<compile_context>
chip_gen: v7x
topology: tpu7x:2x2x1
jax: 0.10.0
libtpu: 0.0.40
codegen_flags: <defaults>
</compile_context>

<pallas_src>
import jax
import jax.numpy as jnp
from jax.experimental import pallas as pl
from jax.experimental.pallas import tpu as pltpu

_EPS = 1e-8           # torch.nn.CosineSimilarity default eps (clamps each norm)
_EPS2 = _EPS * _EPS   # max(sqrt(s), eps) == sqrt(max(s, eps**2))


# ----------------------------------------------------------------------------
# Generation-aware VMEM budgets
# ----------------------------------------------------------------------------
def _round_up(v, mult):
    return ((v + mult - 1) // mult) * mult


def _vmem_capacity_bytes():
    try:
        return int(pltpu.get_tpu_info().vmem_capacity_bytes)
    except Exception:
        return 64 * 1024 * 1024  # conservative (v7x-sized) fallback


def _vmem_budgets():
    phys = _vmem_capacity_bytes()
    vmem_limit = min(phys // 2, 64 * 1024 * 1024)  # 64MiB v5e/v6e, 32MiB v7x
    tile_budget = vmem_limit // 2                  # headroom for compiler scratch
    return vmem_limit, tile_budget


# ----------------------------------------------------------------------------
# Kernels
# ----------------------------------------------------------------------------
def _cosine_rows_kernel(inv_temp_ref, x_ref, y_ref, o_ref):
    """Row-wise cosine: x_ref (TMx, D), y_ref (TMy, D) with TM* in {TM, 1}."""
    x = x_ref[...].astype(jnp.float32)
    y = y_ref[...].astype(jnp.float32)

    dot = jnp.sum(x * y, axis=-1, keepdims=True)
    xx = jnp.sum(x * x, axis=-1, keepdims=True)
    yy = jnp.sum(y * y, axis=-1, keepdims=True)

    # cos = dot / (max(||x||,eps)*max(||y||,eps)) == dot * rsqrt(max(xx,e2)*max(yy,e2))
    denom = jnp.maximum(xx, _EPS2) * jnp.maximum(yy, _EPS2)
    cos = dot * jax.lax.rsqrt(denom)
    o_ref[...] = (cos * inv_temp_ref[0]).astype(o_ref.dtype)


def _allpairs_kernel(inv_temp_ref, x_ref, y_ref, o_ref, acc_ref, xx_ref, yy_ref):
    """All-pairs cosine, K-tiled: x_ref (TM, TK), y_ref (TN, TK) -> o_ref (TM, TN)."""
    k = pl.program_id(2)

    @pl.when(k == 0)
    def _init():
        acc_ref[...] = jnp.zeros_like(acc_ref)
        xx_ref[...] = jnp.zeros_like(xx_ref)
        yy_ref[...] = jnp.zeros_like(yy_ref)

    x = x_ref[...]   # native dtype -> MXU (bf16 stays bf16)
    y = y_ref[...]
    acc_ref[...] += jax.lax.dot_general(
        x, y, (((1,), (1,)), ((), ())), preferred_element_type=jnp.float32)

    # Row squared-norm partial sums (f32 accumulation for accuracy).
    xf = x.astype(jnp.float32)
    yf = y.astype(jnp.float32)
    xx_ref[...] += jnp.sum(xf * xf, axis=-1, keepdims=True)
    yy_ref[...] += jnp.sum(yf * yf, axis=-1, keepdims=True)

    @pl.when(k == pl.num_programs(2) - 1)
    def _finalize():
        invx = jax.lax.rsqrt(jnp.maximum(xx_ref[...], _EPS2))       # (TM, 1)
        invy = jax.lax.rsqrt(jnp.maximum(yy_ref[...], _EPS2))       # (TN, 1)
        scale_rows = invx * inv_temp_ref[0]                         # fold 1/temp
        o_ref[...] = (acc_ref[...] * scale_rows
                      * invy.reshape(1, -1)).astype(o_ref.dtype)


# ----------------------------------------------------------------------------
# Tile selection (VMEM-budgeted, itemsize- & generation-aware)
# ----------------------------------------------------------------------------
def _row_tile(m, d, in_itemsize, n_streams, budget, cap=8192):
    """Rows per tile: streamed inputs (double-buffered) + f32 temps + padded out."""
    per_row = (2 * n_streams * d * in_itemsize   # double-buffered streamed inputs
               + 4 * d * 4                        # in-kernel f32 temporaries
               + 2 * 128 * 4)                     # (tile,1) out pads to 128 lanes, 2 bufs
    t = budget // max(1, per_row)
    t = max(8, min(cap, (t // 8) * 8))
    if m <= t:
        if m >= 16:
            # >=2 blocks so the "parallel" axis can shard across 2 TCs (v7x).
            return min(m, _round_up(-(-m // 2), 8))
        return m
    return t


def _allpairs_tiles(n, mm, d, in_itemsize, out_itemsize, budget):
    """Square-ish MXU tiles (multiples of 128) + K tile, all within budget."""
    tk_min = min(d, 256)
    t = 128
    for cand in (512, 256, 128):
        foot = (4 * cand * tk_min * in_itemsize    # x+y tiles, double-buffered
                + cand * cand * 4                  # f32 accumulator scratch
                + 2 * cand * cand * out_itemsize   # double-buffered output tile
                + 8 * cand)                        # norm scratches
        if foot <= budget:
            t = cand
            break

    # K tile: largest multiple of 128 the remaining budget allows (counting
    # pipeline buffers + in-kernel f32 temporaries), rebalanced so K blocks
    # are as even as possible.
    fixed = t * t * 4 + 2 * t * t * out_itemsize + 8 * t
    per_col = 4 * t * in_itemsize + 4 * t * 4
    tk_fit = max(128, ((budget - fixed) // max(1, per_col)) // 128 * 128)
    if d <= tk_fit:
        tk = d
    else:
        kt = -(-d // tk_fit)
        tk = _round_up(-(-d // kt), 128)

    tm = n if n <= t else t
    tn = mm if mm <= t else t
    if tm >= n and tn >= mm and n >= 16:
        # Avoid a 1x1 spatial grid so "parallel" axes can shard across 2 TCs.
        tm = min(n, _round_up(-(-n // 2), 8))
    return tm, tn, tk


# ----------------------------------------------------------------------------
# pallas_call wrappers
# ----------------------------------------------------------------------------
def _rowwise_cosine(xf, yf, x_bcast, y_bcast, inv_temp, m, d, out_dtype):
    vmem_limit, budget = _vmem_budgets()
    in_itemsize = max(jnp.dtype(xf.dtype).itemsize, jnp.dtype(yf.dtype).itemsize)
    n_streams = max(1, (0 if x_bcast else 1) + (0 if y_bcast else 1))
    tile_m = _row_tile(m, d, in_itemsize, n_streams, budget)
    grid = (pl.cdiv(m, tile_m),)

    def in_spec(is_broadcast_row):
        if is_broadcast_row:
            return pl.BlockSpec((1, d), lambda i: (0, 0))
        return pl.BlockSpec((tile_m, d), lambda i: (i, 0))

    flops = 8 * m * d
    bytes_accessed = (xf.size * jnp.dtype(xf.dtype).itemsize
                      + yf.size * jnp.dtype(yf.dtype).itemsize
                      + m * jnp.dtype(out_dtype).itemsize)

    out = pl.pallas_call(
        _cosine_rows_kernel,
        out_shape=jax.ShapeDtypeStruct((m, 1), out_dtype),
        grid_spec=pltpu.PrefetchScalarGridSpec(
            num_scalar_prefetch=0,
            grid=grid,
            in_specs=[
                pl.BlockSpec(memory_space=pltpu.MemorySpace.SMEM),  # inv_temp
                in_spec(x_bcast),
                in_spec(y_bcast),
            ],
            out_specs=pl.BlockSpec((tile_m, 1), lambda i: (i, 0)),
        ),
        compiler_params=pltpu.CompilerParams(
            dimension_semantics=("parallel",),
            vmem_limit_bytes=vmem_limit,
        ),
        cost_estimate=pl.CostEstimate(
            flops=int(flops), transcendentals=int(m),
            bytes_accessed=int(bytes_accessed)),
    )(inv_temp, xf, yf)
    return out[:, 0]


def _all_pairs_cosine(x2, y2, inv_temp, out_dtype):
    n, d = x2.shape
    mm = y2.shape[0]

    mm_dtype = jnp.result_type(x2.dtype, y2.dtype)
    if not jnp.issubdtype(mm_dtype, jnp.floating):
        mm_dtype = jnp.float32
    x2 = x2.astype(mm_dtype)
    y2 = y2.astype(mm_dtype)

    vmem_limit, budget = _vmem_budgets()
    in_itemsize = jnp.dtype(mm_dtype).itemsize
    out_itemsize = jnp.dtype(out_dtype).itemsize
    tm, tn, tk = _allpairs_tiles(n, mm, d, in_itemsize, out_itemsize, budget)

    # K-tiling: zero-pad D so it divides into TK blocks (zeros change neither
    # dot products nor norms); avoids garbage in partial K blocks.
    kt = -(-d // tk)
    if kt > 1 and kt * tk != d:
        pad = kt * tk - d
        x2 = jnp.pad(x2, ((0, 0), (0, pad)))
        y2 = jnp.pad(y2, ((0, 0), (0, pad)))
    d_eff = x2.shape[1]
    kt = -(-d_eff // tk)

    grid = (pl.cdiv(n, tm), pl.cdiv(mm, tn), kt)

    flops = 2 * n * mm * d + 4 * n * mm
    bytes_accessed = (n * d_eff * in_itemsize * pl.cdiv(mm, tn)
                      + mm * d_eff * in_itemsize * pl.cdiv(n, tm)
                      + n * mm * out_itemsize)

    out = pl.pallas_call(
        _allpairs_kernel,
        out_shape=jax.ShapeDtypeStruct((n, mm), out_dtype),
        grid_spec=pltpu.PrefetchScalarGridSpec(
            num_scalar_prefetch=0,
            grid=grid,
            in_specs=[
                pl.BlockSpec(memory_space=pltpu.MemorySpace.SMEM),  # inv_temp
                pl.BlockSpec((tm, tk), lambda i, j, k: (i, k)),
                pl.BlockSpec((tn, tk), lambda i, j, k: (j, k)),
            ],
            out_specs=pl.BlockSpec((tm, tn), lambda i, j, k: (i, j)),
            scratch_shapes=[
                pltpu.VMEM((tm, tn), jnp.float32),   # K accumulator
                pltpu.VMEM((tm, 1), jnp.float32),    # sum x^2
                pltpu.VMEM((tn, 1), jnp.float32),    # sum y^2
            ],
        ),
        compiler_params=pltpu.CompilerParams(
            dimension_semantics=("parallel", "parallel", "arbitrary"),
            vmem_limit_bytes=vmem_limit,
        ),
        cost_estimate=pl.CostEstimate(
            flops=int(flops), transcendentals=int(n + mm),
            bytes_accessed=int(bytes_accessed)),
    )(inv_temp, x2, y2)
    return out


# ----------------------------------------------------------------------------
# Public entry point (mirrors Similarity.forward)
# ----------------------------------------------------------------------------
def similarity(x, y, temp):
    """cosine_similarity(x, y, dim=-1) / temp with torch-style broadcasting."""
    x = jnp.asarray(x)
    y = jnp.asarray(y)
    bshape = jnp.broadcast_shapes(x.shape, y.shape)
    d = bshape[-1]
    batch_shape = bshape[:-1]
    out_dtype = jnp.result_type(x.dtype, y.dtype)
    if not jnp.issubdtype(out_dtype, jnp.floating):
        out_dtype = jnp.float32

    # 1/temp as a traced SMEM scalar (supports learned temperatures).
    inv_temp = (1.0 / jnp.asarray(temp, dtype=jnp.float32)).reshape(1)

    # --- All-pairs (SimCSE) MXU path: x:(N,1,D) vs y:(1,M,D) (or swapped). ---
    if x.ndim == 3 and y.ndim == 3 and x.shape[-1] == d and y.shape[-1] == d:
        if x.shape[1] == 1 and y.shape[0] == 1 and (x.shape[0] > 1 or y.shape[1] > 1):
            out = _all_pairs_cosine(x.reshape(x.shape[0], d),
                                    y.reshape(y.shape[1], d),
                                    inv_temp, out_dtype)
            return out.reshape(batch_shape)
        if x.shape[0] == 1 and y.shape[1] == 1 and (y.shape[0] > 1 or x.shape[1] > 1):
            out = _all_pairs_cosine(y.reshape(y.shape[0], d),
                                    x.reshape(x.shape[1], d),
                                    inv_temp, out_dtype)
            return out.reshape(batch_shape)

    # --- Row-wise path (no broadcast materialization where avoidable). ---
    m = 1
    for s in batch_shape:
        m *= s

    def _leading_size(a):
        sz = 1
        for s in a.shape[:-1]:
            sz *= s
        return sz

    def _as_rows(a):
        if a.shape == bshape:
            return a.reshape(m, d), False
        if a.shape[-1] == d and _leading_size(a) == 1:
            return a.reshape(1, d), True      # repeated via index_map, never copied
        # TODO(synk): general non-materializing broadcast (per-axis index_map);
        # rare irregular patterns fall back to a materialized broadcast.
        return jnp.broadcast_to(a, bshape).reshape(m, d), False

    xf, x_bcast = _as_rows(x)
    yf, y_bcast = _as_rows(y)

    out = _rowwise_cosine(xf, yf, x_bcast, y_bcast, inv_temp, m, d, out_dtype)
    return out.reshape(batch_shape)


# ----------------------------------------------------------------------------
# Reference + self-test
# ----------------------------------------------------------------------------
def _reference(x, y, temp):
    xb, yb = jnp.broadcast_arrays(x, y)
    x32 = xb.astype(jnp.float32)
    y32 = yb.astype(jnp.float32)
    dot = jnp.sum(x32 * y32, axis=-1)
    xn = jnp.maximum(jnp.sqrt(jnp.sum(x32 * x32, axis=-1)), _EPS)
    yn = jnp.maximum(jnp.sqrt(jnp.sum(y32 * y32, axis=-1)), _EPS)
    return (dot / (xn * yn)) / temp


if __name__ == "__main__":
    key = jax.random.PRNGKey(0)
    k1, k2 = jax.random.split(key)

    batch, seq, hidden = 2, 8, 32
    temp = 0.05  # typical SimCSE temperature

    x = jax.random.normal(k1, (batch, seq, hidden), dtype=jnp.float32)
    y = jax.random.normal(k2, (batch, seq, hidden), dtype=jnp.float32)

    # 1) element-wise case [B, S, D] -> [B, S]
    out_ew = jax.block_until_ready(similarity(x, y, temp))
    ref_ew = _reference(x, y, temp)
    assert out_ew.shape == (batch, seq), out_ew.shape
    assert jnp.allclose(out_ew, ref_ew, atol=1e-5, rtol=1e-5), (
        float(jnp.max(jnp.abs(out_ew - ref_ew))))

    # 2) contrastive all-pairs case: x[:,None,:] vs y[None,:,:] -> [N, N] (MXU path)
    xf = x.reshape(batch * seq, hidden)
    yf = y.reshape(batch * seq, hidden)
    out_ap = jax.block_until_ready(similarity(xf[:, None, :], yf[None, :, :], temp))
    ref_ap = _reference(xf[:, None, :], yf[None, :, :], temp)
    assert out_ap.shape == (batch * seq, batch * seq), out_ap.shape
    assert jnp.allclose(out_ap, ref_ap, atol=1e-4, rtol=1e-4), (
        float(jnp.max(jnp.abs(out_ap - ref_ap))))

    # 3) traced (learned) temperature under jit
    out_tr = jax.block_until_ready(
        jax.jit(lambda a, b, t: similarity(a, b, t))(x, y, jnp.float32(temp)))
    assert jnp.allclose(out_tr, ref_ew, atol=1e-5, rtol=1e-5)

    print("KERNEL_OK")
</pallas_src>

<mosaic_0001>
module attributes {stable_mosaic.version = 11 : i64} {
  func.func @_cosine_rows_kernel(%arg0: i32, %arg1: memref<1xf32, #tpu.memory_space<smem>>, %arg2: memref<8x32xf32, #tpu.memory_space<vmem>>, %arg3: memref<8x32xf32, #tpu.memory_space<vmem>>, %arg4: memref<8x1xf32, #tpu.memory_space<vmem>>) attributes {dimension_semantics = [#tpu.dimension_semantics<parallel>], iteration_bounds = array<i64: 2>, scalar_prefetch = 0 : i64, scratch_operands = 0 : i64, tpu.core_type = #tpu.core_type<tc>, window_params = [{transform_indices = @transform_0, window_bounds = array<i64: 1>}, {transform_indices = @transform_1, window_bounds = array<i64: 8, 32>}, {transform_indices = @transform_2, window_bounds = array<i64: 8, 32>}, {transform_indices = @transform_3, window_bounds = array<i64: 8, 1>}]} {
    %c0 = arith.constant 0 : index
    %c0_0 = arith.constant 0 : index
    %0 = vector.load %arg2[%c0, %c0_0] : memref<8x32xf32, #tpu.memory_space<vmem>>, vector<8x32xf32>
    %c0_1 = arith.constant 0 : index
    %c0_2 = arith.constant 0 : index
    %1 = vector.load %arg3[%c0_1, %c0_2] : memref<8x32xf32, #tpu.memory_space<vmem>>, vector<8x32xf32>
    %2 = arith.mulf %0, %1 : vector<8x32xf32>
    %cst = arith.constant dense<0.000000e+00> : vector<8xf32>
    %3 = vector.multi_reduction <add>, %2, %cst [1] : vector<8x32xf32> to vector<8xf32>
    %4 = vector.shape_cast %3 : vector<8xf32> to vector<8x1xf32>
    %5 = arith.mulf %0, %0 : vector<8x32xf32>
    %cst_3 = arith.constant dense<0.000000e+00> : vector<8xf32>
    %6 = vector.multi_reduction <add>, %5, %cst_3 [1] : vector<8x32xf32> to vector<8xf32>
    %7 = vector.shape_cast %6 : vector<8xf32> to vector<8x1xf32>
    %8 = arith.mulf %1, %1 : vector<8x32xf32>
    %cst_4 = arith.constant dense<0.000000e+00> : vector<8xf32>
    %9 = vector.multi_reduction <add>, %8, %cst_4 [1] : vector<8x32xf32> to vector<8xf32>
    %10 = vector.shape_cast %9 : vector<8xf32> to vector<8x1xf32>
    %cst_5 = arith.constant 1.000000e-16 : f32
    %11 = vector.broadcast %cst_5 : f32 to vector<8x1xf32>
    %12 = arith.maximumf %7, %11 : vector<8x1xf32>
    %cst_6 = arith.constant 1.000000e-16 : f32
    %13 = vector.broadcast %cst_6 : f32 to vector<8x1xf32>
    %14 = arith.maximumf %10, %13 : vector<8x1xf32>
    %15 = arith.mulf %12, %14 : vector<8x1xf32>
    %16 = math.rsqrt %15 : vector<8x1xf32>
    %17 = arith.mulf %4, %16 : vector<8x1xf32>
    %c0_7 = arith.constant 0 : index
    %18 = memref.load %arg1[%c0_7] : memref<1xf32, #tpu.memory_space<smem>>
    %19 = vector.broadcast %18 : f32 to vector<8x1xf32>
    %20 = arith.mulf %17, %19 : vector<8x1xf32>
    %c0_8 = arith.constant 0 : index
    %c0_9 = arith.constant 0 : index
    %21 = vector.load %arg4[%c0_8, %c0_9] : memref<8x1xf32, #tpu.memory_space<vmem>>, vector<8x1xf32>
    tpu.vector_store %arg4[%c0_8, %c0_9], %20 {strides = array<i32>} : memref<8x1xf32, #tpu.memory_space<vmem>>, vector<8x1xf32>,
    return
  }
  func.func @transform_0(%arg0: i32) -> i32 {
    %c0_i32 = arith.constant 0 : i32
    %c0_i32_0 = arith.constant 0 : i32
    return %c0_i32 : i32
  }
  func.func @transform_1(%arg0: i32) -> (i32, i32) {
    %c0_i32 = arith.constant 0 : i32
    %c0_i32_0 = arith.constant 0 : i32
    return %arg0, %c0_i32 : i32, i32
  }
  func.func @transform_2(%arg0: i32) -> (i32, i32) {
    %c0_i32 = arith.constant 0 : i32
    %c0_i32_0 = arith.constant 0 : i32
    return %arg0, %c0_i32 : i32, i32
  }
  func.func @transform_3(%arg0: i32) -> (i32, i32) {
    %c0_i32 = arith.constant 0 : i32
    %c0_i32_0 = arith.constant 0 : i32
    return %arg0, %c0_i32 : i32, i32
  }
}

</mosaic_0001>

<bundles_post_ra>
// kernel: tpu_custom_call.1
= control target key start
LH: loop header
LB: loop body
LE: loop exit
PB: predicated region body
PF: predicated region fallthrough
CT: control target
= control target key end

     0   :  { %s675_s0 = inlined_call_operand.<no memory space> [shape: f32[1], index: 0, kind: input, shape index: {}]   ;;  %s676_s1 = inlined_call_operand.hbm [shape: f32[16,32], index: 1, kind: input, shape index: {}]   ;;  %s677_s2 = inlined_call_operand.hbm [shape: f32[16,32], index: 2, kind: input, shape index: {}]   ;;  %s678_s3 = inlined_call_operand.vmem [shape: f32[16,1], index: 3, kind: output, shape index: {}]  }
   0x1   :  { %8 = sst [smem:[#allocation2]] %s675_s0 }
   0x2   :  { %9 = vsyncpa [#allocation4], 0 }
   0x3   :  { %11 = vsyncpa [#allocation4 + $0x1], 0 }
   0x4   :  { %12 = vsyncpa [#allocation6], 0 }
   0x5   :  { %14 = vsyncpa [#allocation6 + $0x1], 0  ;;  %s521_s14 = smov 0   ;;  %s523_s15 = smov 0  }
   0x6   :  { %s525_s16 = smov 0   ;;  %s527_s17 = smov 0  }
   0x7 LB: > { %s540_s0 = sadd.s32 4294967295, %s494_s17   ;;  %s543_s18 = sadd.s32 1, %s494_s17   ;;  %s494_s17 = sphi %s527_s17, %s690_s17   ;;  %s490_s16 = sphi %s525_s16, %s689_s16   ;;  %s486_s15 = sphi %s523_s15, %s688_s15   ;;  %s482_s14 = sphi %s521_s14, %s687_s14  }
   0x8   : > { %s45_s19 = ssub.s32 %s494_s17, %s543_s18  ;;  %s48_s20 = sadd.s32 1, %s490_s16 }
   0x9   : > { %p46_p0 = scmp.eq.s32.totalorder %s45_s19, 0  ;;  %p55_p1 = scmp.ne.s32.totalorder %s490_s16, %s486_s15 }
   0xa   : > { %p56_p2 = scmp.eq.s32.totalorder %s494_s17, 0  ;;  %p61_p3 = scmp.ne.s32.totalorder %s486_s15, %s482_s14 }
   0xb   : > { %s553_s21 = scalar_select %p46_p0, %s490_s16, %s48_s20  }
   0xc   : > { %p57_p4 = por %p56_p2, %p55_p1  ;;  %p62_p5 = scmp.eq.s32.totalorder %s540_s0, 0 }
   0xd   : > { %p361_p6 = scmp.lt.s32.totalorder %s494_s17, 2  ;;  %s562_s23 = sand.u32 1, %s490_s16  }
   0xe   : > { %p557_p7 = por %p62_p5, %p61_p3  ;;  %s340_s24 = sshll.u32 %s562_s23, 3 }
   0xf   : > { %s341_s25 = sshll.u32 %s494_s17, 7  ;;  %s144_s29 = scalar_lea.vmem [#allocation3], %s340_s24 }
  0x10   : > { %s680_s22 = scalar_select %p557_p7, 1, 0 }
  0x11   : > { %s571_s28 = scalar_lea.hbm %s676_s1, %s341_s25  ;;  %s151_s30 = sshll.u32 %s144_s29, 4  ;;  %s575_s30 = int_to_ptr.vmem [resolvable:$true] %s151_s30 }
  0x12   : > { %p577_p8 = pnand %p361_p6, %p57_p4  ;;  %s141_s5 = scalar_lea.sflag [#allocation4], %s562_s23 }
  0x13   : > { %s396_s6 = scalar_lea.hbm %s571_s28, 128  ;;  %s401_s9 = scalar_lea.hbm %s676_s1, 256 }
  0x14   : > { %p397_p11 = scmp.ne.s32.totalorder %s571_s28, %s396_s6  ;;  %p398_p12 = pneg %p577_p8 }
  0x15   : > { %p402_p1 = scmp.lt.u32.totalorder %s571_s28, %s676_s1  ;;  %p403_p2 = scmp.lt.u32.totalorder %s401_s9, %s396_s6 }
  0x16   : > { %p399_p13 = pnand %p398_p12, %p397_p11  ;;  %p405_p4 = scmp.lt.u32.totalorder %s396_s6, %s571_s28 }
  0x17   : > { %p404_p3 = por %p403_p2, %p402_p1 }
  0x18   : > { %p400_p0 = pneg %p399_p13 }
  0x19   : > { %p406_p5 = por %p405_p4, %p404_p3 }
  0x1b   : > { %p407_p6 = pnand %p406_p5, %p400_p0 }
  0x1d   : > { %410 = shalt.err (!%p407_p6)
}
  0x1e   : > { %s411_s12 = scalar_lea.vmem %s575_s30, 128  ;;  %s496_s13 = smov [#allocation3]  }
  0x1f   : > { %p412_p11 = scmp.ne.s32.totalorder %s575_s30, %s411_s12  ;;  %s416_s14 = sshll.u32 %s496_s13, 4  ;;  %s417_s14 = int_to_ptr.vmem [resolvable:$false] %s416_s14 }
  0x20   : > { %s418_s19 = scalar_lea.vmem %s417_s14, 256  ;;  %p419_p10 = scmp.lt.s32.totalorder %s575_s30, %s417_s14 }
  0x21   : > { %p414_p13 = pnand %p412_p11, %p398_p12  ;;  %p420_p1 = scmp.lt.s32.totalorder %s418_s19, %s411_s12 }
  0x23   : > { %p415_p9 = pneg %p414_p13  ;;  %p421_p2 = por %p420_p1, %p419_p10 }
  0x25   : > { %p422_p3 = pnand %p421_p2, %p415_p9 }
  0x27   : > { %425 = shalt.err (!%p422_p3)
}
  0x28   : > { %357 = dma.hbm_to_vmem [thread:$0]  (!%p577_p8), %s571_s28, 128, %s575_s30, %s141_s5  }
  0x29   : > { %p682_p0 = scmp.lt.s32.totalorder %s494_s17, 3  ;;  %p683_p4 = scmp.ge.s32.totalorder %s494_s17, 1 }
  0x2a   : > { %s622_s29 = scalar_lea.hbm %s677_s2, %s341_s25  ;;  %s162_s6 = scalar_lea.vmem [#allocation5], %s340_s24 }
  0x2b   : > { %p613_p5 = pnand %p683_p4, %p682_p0  ;;  %s169_s7 = sshll.u32 %s162_s6, 4  ;;  %s170_s7 = int_to_ptr.vmem [resolvable:$true] %s169_s7 }
  0x2c   : > { %s159_s28 = scalar_lea.sflag [#allocation6], %s562_s23  ;;  %s426_s30 = scalar_lea.hbm %s622_s29, 128 }
  0x2d   : > { %s684_s20 = scalar_select %p613_p5, 1, 0 }
  0x2e   : > { %p427_p9 = scmp.ne.s32.totalorder %s622_s29, %s426_s30  ;;  %s431_s25 = scalar_lea.hbm %s677_s2, 256 }
  0x2f   : > { %p432_p11 = scmp.lt.u32.totalorder %s622_s29, %s677_s2  ;;  %p433_p13 = scmp.lt.u32.totalorder %s431_s25, %s426_s30 }
  0x30   : > { %p429_p10 = pnand %p427_p9, %p398_p12  ;;  %p435_p2 = scmp.lt.u32.totalorder %s426_s30, %s622_s29 }
  0x31   : > { %p434_p1 = por %p433_p13, %p432_p11 }
  0x32   : > { %p430_p6 = pneg %p429_p10 }
  0x33   : > { %p436_p3 = por %p435_p2, %p434_p1 }
  0x35   : > { %p437_p0 = pnand %p436_p3, %p430_p6 }
  0x37   : > { %440 = shalt.err (!%p437_p0)
}
  0x38   : > { %s441_s23 = scalar_lea.vmem %s170_s7, 128  ;;  %s497_s24 = smov [#allocation5]  }
  0x39   : > { %p442_p4 = scmp.ne.s32.totalorder %s170_s7, %s441_s23  ;;  %s446_s10 = sshll.u32 %s497_s24, 4  ;;  %s447_s10 = int_to_ptr.vmem [resolvable:$false] %s446_s10 }
  0x3a   : > { %s448_s11 = scalar_lea.vmem %s447_s10, 256  ;;  %p449_p7 = scmp.lt.s32.totalorder %s170_s7, %s447_s10 }
  0x3b   : > { %p444_p9 = pnand %p442_p4, %p398_p12  ;;  %p450_p5 = scmp.lt.s32.totalorder %s448_s11, %s441_s23 }
  0x3d   : > { %p445_p10 = pneg %p444_p9  ;;  %p451_p11 = por %p450_p5, %p449_p7 }
  0x3f   : > { %p452_p13 = pnand %p451_p11, %p445_p10 }
  0x41   : > { %455 = shalt.err (!%p452_p13)
}
  0x42   : > { %360 = dma.hbm_to_vmem [thread:$0]  (!%p577_p8), %s622_s29, 128, %s170_s7, %s159_s28  }
  0x43   : > { %p685_p6 = scmp.ne.s32.totalorder %s684_s20, 0 }
  0x44   : > { %s180_s12 = sand.u32 (!%p685_p6), 1, %s486_s15   ;;  %p686_p12 = scmp.ne.s32.totalorder (!%p685_p6), %s680_s22, 0 }
  0x45   : > { %178 = sbr.rel (%p685_p6) target bundleno = 249 (0xf9), region = 32  ;;  %s345_s13 = sshll.u32 (!%p685_p6), %s180_s12, 3 }
  0x46   : > { %s181_s14 = scalar_lea.sflag (!%p685_p6), [#allocation4], %s180_s12  ;;  %s184_s19 = scalar_lea.vmem (!%p685_p6), [#allocation3], %s345_s13 }
  0x4c   : > { %473 = dma.done.wait (%p686_p12), %s181_s14, 128  }
  0x4d   : > { %475 = vsyncadd (%p686_p12), %s181_s14, 4294967168  ;;  %s190_s26 = scalar_lea.sflag [#allocation6], %s180_s12  ;;  %s193_s27 = scalar_lea.vmem [#allocation5], %s345_s13 }
  0x4e   : > { %477 = dma.done.wait (%p686_p12), %s190_s26, 128  }
  0x4f   : > { %479 = vsyncadd (%p686_p12), %s190_s26, 4294967168  ;;  %v224_v0 = vld [vmem:[%s184_s19] sm:$0xff]  ;;  %vm227_vm0 = vcmask 261120   ;;  %v225_v1 = vld [vmem:[%s193_s27] sm:$0xff]  ;;  %p220_p7 = scmp.lt.s32.totalorder %s540_s0, 1  ;;  %s244_s22 = sld [smem:[#allocation2]] }
  0x50   : > { %v231_v2 = vmul.f32 %v224_v0, %v224_v0  ;;  %v235_v3 = vmul.f32 %v225_v1, %v225_v1  ;;  %v226_v4 = vmul.f32 %v225_v1, %v224_v0  ;;  %vm247_vm1 = vcmask 7168  }
  0x51   : > { %s692_s0 = smov (!%p220_p7, %s540_s0), 1 }
  0x52   : > { %v232_v5 = vsel %vm227_vm0, %v231_v2, 0.0  ;;  %v228_v6 = vsel %vm227_vm0, %v226_v4, 0.0  ;;  %v236_v7 = vsel %vm227_vm0, %v235_v3, 0.0  ;;  %s347_s4 = sshll.u32 %s692_s0, 3 }
  0x53   : > { %233 = vadd.xlane.f32.xlu0 %v232_v5  ;;  %229 = vadd.xlane.f32.xlu1 %v228_v6  ;;  %s223_s6 = scalar_lea.vmem %s678_s3, %s347_s4 }
  0x55   : > { %v245_v15 = vstv %s244_s22 }
  0x57   : > { %237 = vadd.xlane.f32.xlu0 %v236_v7 }
  0xe0   : > { %v234_v8 = vpop.xlane.xlu0 %233  ;;  %v230_v13 = vpop.xlane.xlu1 %229 }
  0xe1   : > { %v239_v10 = vmax.f32 %v234_v8, 1e-16 }
  0xe4   : > { %v238_v9 = vpop.xlane.xlu0 %237 }
  0xe5   : > { %v240_v11 = vmax.f32 %v238_v9, 1e-16 }
  0xe7   : > { %v241_v12 = vmul.f32 %v240_v11, %v239_v10 }
  0xe9   : > { %394 = vrsqrt.f32 %v241_v12 }
  0xf3   : > { %v395_v14 = vpop.eup %394 }
  0xf4   : > { %v243_v16 = vmul.f32 %v395_v14, %v230_v13 }
  0xf6   : > { %v246_v17 = vmul.f32 %v245_v15, %v243_v16 }
  0xf8   : > { %248 = vst.msk [vmem:[%s223_s6] sm:$0xff] %vm247_vm1, %v246_v17 }
  0xf9 PF: > { %p17_p8 = scmp.ge.s32.totalorder %s543_s18, 4   ;;  %s687_s14 = smov %s486_s15 }
  0xfa   : > { %s688_s15 = smov %s490_s16  ;;  %s689_s16 = smov %s553_s21 }
  0xfb   : > { %s690_s17 = smov %s543_s18  ;;  %19 = sbr.rel (!%p17_p8) target bundleno = 7 (0x7), region = 85 }
 0x102   :  { %268 = vsyncpa [#allocation4], 1 }
 0x103   :  { %270 = vsyncpa [#allocation4 + $0x1], 1 }
 0x104   :  { %271 = vsyncpa [#allocation6], 1 }
 0x105   :  { %273 = vsyncpa [#allocation6 + $0x1], 1 }

</bundles_post_ra>
